<compile_context>
chip_gen: v7x
topology: tpu7x:2x2x1
jax: 0.10.0
libtpu: 0.0.40
codegen_flags: <defaults>
</compile_context>

<pallas_src>
from functools import partial

import numpy as np
import jax
import jax.numpy as jnp
from jax import lax
from jax.experimental import pallas as pl
from jax.experimental.pallas import tpu as pltpu


def _sublane_multiple(dtype):
    """Minimum sublane multiple for the (rows, D) BlockSpec of this dtype."""
    itemsize = jnp.dtype(dtype).itemsize
    return max(8, 32 // max(1, itemsize))     # f32->8, bf16->16, int8/fp8->32


def _pick_row_tile(B, D, itemsize, sublane, target_block_bytes):
    """Largest multiple-of-`sublane` divisor of B whose (TB, D) block stays
    under ~target_block_bytes (keeps double-buffered student/teacher blocks
    plus the q scratch inside the scoped-VMEM budget)."""
    max_rows = max(sublane,
                   (target_block_bytes // max(1, D * itemsize)) // sublane * sublane)
    best = sublane
    cand = sublane
    limit = min(B, max_rows)
    while cand <= limit:
        if B % cand == 0:
            best = cand
        cand += sublane
    return best


def _pick_lane_chunk(D, TB):
    """Largest multiple-of-128 divisor of D such that a (TB, chunk) f32
    temporary is ~8-16 vregs, so the student/teacher inner loops never spill
    a (TB, D) intermediate to VMEM."""
    if D % 128 != 0:
        return D                                    # tiny / irregular D: single pass
    desired = max(128, min(D, (16384 // max(8, TB)) // 128 * 128))
    c = desired
    while c >= 128:
        if D % c == 0:
            return c
        c -= 128
    return D


def _vmem_plan():
    """(target_block_bytes, vmem_limit_bytes), per TPU generation.
    v5e/v6e have 128 MiB VMEM -> big blocks amortize the ~0.35 us grid-step
    overhead; v7x has 64 MiB per TC -> cap blocks so double buffers + the q
    scratch leave pipeline headroom. Unknown hardware falls back to the
    conservative (v7x-safe) plan."""
    cap = None
    try:
        info = pltpu.get_tpu_info()
        cap = getattr(info, "vmem_capacity_bytes", None)
    except Exception:
        cap = None
    if cap is None or cap <= 64 * 1024 * 1024:
        return 4 * 1024 * 1024, 40 * 1024 * 1024
    return 8 * 1024 * 1024, 64 * 1024 * 1024


def _dino_loss_kernel(teacher_ref, center_ref, student_ref, out_ref,
                      q_ref, tinv_ref, acc_ref,
                      *, inv_temp, inv_student_temp, neg_scale,
                      chunk, n_chunks, unroll):
    i = pl.program_id(1)                        # student crop v = i + 1
    tb = teacher_ref.shape[0]

    def chunk_offset(c):
        if isinstance(c, (int, np.integer)):
            return c * chunk                    # static path (n_chunks == 1)
        return pl.multiple_of(c * chunk, chunk)

    def lane_slice(ref, c):
        return ref[:, pl.ds(chunk_offset(c), chunk)]

    def chunk_loop(body, init):
        # Small D: one fully static pass. Large D: stream the lane dim so the
        # per-chunk temporaries stay in vregs instead of spilling to VMEM.
        if n_chunks == 1:
            return body(0, init)
        return lax.fori_loop(0, n_chunks, body, init, unroll=unroll)

    # --------- teacher softmax, hoisted: computed once per row tile ---------
    @pl.when(i == 0)
    def _():
        acc_ref[...] = jnp.zeros_like(acc_ref)

        def t_max_body(c, m):
            t = (lane_slice(teacher_ref, c).astype(jnp.float32)
                 - lane_slice(center_ref, c).astype(jnp.float32)) * inv_temp
            return jnp.maximum(m, jnp.max(t, axis=-1, keepdims=True))

        t_max = chunk_loop(t_max_body,
                           jnp.full((tb, 1), -jnp.inf, jnp.float32))

        def t_exp_body(c, s):
            off = chunk_offset(c)
            t = (teacher_ref[:, pl.ds(off, chunk)].astype(jnp.float32)
                 - center_ref[:, pl.ds(off, chunk)].astype(jnp.float32)) * inv_temp
            et = jnp.exp(t - t_max)
            q_ref[:, pl.ds(off, chunk)] = et    # UNNORMALIZED teacher probs
            return s + jnp.sum(et, axis=-1, keepdims=True)

        t_sum = chunk_loop(t_exp_body, jnp.zeros((tb, 1), jnp.float32))
        # The per-row 1/sum is folded into the q.s reduction below, so q_ref
        # never needs a second normalization pass over (TB, D).
        tinv_ref[...] = pl.reciprocal(t_sum, approx=False)

    # --------- student crop i+1: fused sum_d q * log_softmax(s) -------------
    # Using sum_d q == 1:  sum_d q*logp = sum_d q*s - (row_max + logsumexp(s)).
    def s_max_body(c, m):
        s = lane_slice(student_ref, c).astype(jnp.float32) * inv_student_temp
        return jnp.maximum(m, jnp.max(s, axis=-1, keepdims=True))

    s_max = chunk_loop(s_max_body, jnp.full((tb, 1), -jnp.inf, jnp.float32))

    def s_sum_body(c, carry):
        e_sum, qs = carry
        s = lane_slice(student_ref, c).astype(jnp.float32) * inv_student_temp
        e_sum = e_sum + jnp.sum(jnp.exp(s - s_max), axis=-1, keepdims=True)
        qs = qs + jnp.sum(lane_slice(q_ref, c) * s, axis=-1, keepdims=True)
        return e_sum, qs

    e_sum, qs = chunk_loop(s_sum_body,
                           (jnp.zeros((tb, 1), jnp.float32),
                            jnp.zeros((tb, 1), jnp.float32)))

    # Per-row sum_d q*logp, accumulated across crops (reduced only at the end).
    acc_ref[...] += qs * tinv_ref[...] - s_max - jnp.log(e_sum)

    # --------- finalize this row tile's partial loss -------------------------
    @pl.when(i == pl.num_programs(1) - 1)
    def _():
        partial = jnp.sum(acc_ref[...]) * neg_scale
        out_ref[...] = jnp.full(out_ref.shape, partial, dtype=jnp.float32)


def dino_loss_pallas(student_output, teacher_output, center, temp,
                     ncrops, student_temp=0.1, target_block_bytes=None):
    total_rows, D = student_output.shape
    assert ncrops >= 2, "need at least one student crop besides the teacher view"
    assert total_rows % ncrops == 0, "student rows must be ncrops * batch"
    B = total_rows // ncrops
    assert teacher_output.shape == (B, D)
    assert center.shape == (1, D)

    sublane = max(_sublane_multiple(student_output.dtype),
                  _sublane_multiple(teacher_output.dtype))
    # TODO(synk): pad/mask row tiles to support per-crop batches that are not a
    # multiple of the dtype sublane packing (8 f32 / 16 bf16 / 32 int8).
    assert B % sublane == 0, (
        f"per-crop batch ({B}) must be a multiple of {sublane} for "
        f"{jnp.dtype(student_output.dtype).name} activations")

    n_loss_terms = ncrops - 1
    plan_block_bytes, vmem_limit = _vmem_plan()
    if target_block_bytes is None:
        target_block_bytes = plan_block_bytes

    TB = _pick_row_tile(B, D, jnp.dtype(student_output.dtype).itemsize,
                        sublane, target_block_bytes)
    blocks_per_crop = B // TB
    chunk = _pick_lane_chunk(D, TB)
    n_chunks = D // chunk

    kernel = partial(
        _dino_loss_kernel,
        # Compile-time constants (temps only change per epoch; recompile is OK).
        inv_temp=float(1.0 / float(temp)),
        inv_student_temp=float(1.0 / float(student_temp)),
        neg_scale=float(-1.0 / (B * n_loss_terms)),
        chunk=chunk, n_chunks=n_chunks, unroll=bool(n_chunks <= 8),
    )

    partials = pl.pallas_call(
        kernel,
        out_shape=jax.ShapeDtypeStruct((blocks_per_crop, 8, 128), jnp.float32),
        grid_spec=pltpu.PrefetchScalarGridSpec(
            num_scalar_prefetch=0,
            grid=(blocks_per_crop, n_loss_terms),          # (row tiles, crops)
            in_specs=[
                # teacher row tile: resident across the crop axis (fetched once per r)
                pl.BlockSpec((TB, D), lambda r, i: (r, 0)),
                # center: resident for the whole grid
                pl.BlockSpec((1, D), lambda r, i: (0, 0)),
                # student crop v = i + 1, row tile r
                pl.BlockSpec((TB, D),
                             lambda r, i: ((i + 1) * blocks_per_crop + r, 0)),
            ],
            # Lane-dense per-row-tile partial loss; written once at the last crop.
            out_specs=pl.BlockSpec((1, 8, 128), lambda r, i: (r, 0, 0)),
            scratch_shapes=[
                pltpu.VMEM((TB, D), jnp.float32),   # hoisted teacher exp (unnormalized)
                pltpu.VMEM((TB, 1), jnp.float32),   # per-row 1/sum of teacher exp
                pltpu.VMEM((TB, 1), jnp.float32),   # per-row loss accumulator over crops
            ],
        ),
        compiler_params=pltpu.CompilerParams(
            # Row tiles are independent -> "parallel" lets v7x split them over
            # its two TensorCores; crop axis accumulates -> "arbitrary".
            dimension_semantics=("parallel", "arbitrary"),
            vmem_limit_bytes=vmem_limit,
        ),
    )(teacher_output, center, student_output)

    # Tiny final reduce over row-tile partials (already scaled by -1/(B*n_terms)).
    return jnp.sum(partials[:, 0, 0])


def dino_loss_ref(student_output, teacher_output, center, temp,
                  ncrops, student_temp=0.1):
    """Pure-JAX reference mirroring the PyTorch forward."""
    student_out = student_output / student_temp
    chunks = jnp.split(student_out, ncrops, axis=0)
    q = jax.nn.softmax((teacher_output - center) / temp, axis=-1)
    total = 0.0
    n = 0
    for v in range(ncrops):
        if v == 0:  # iq == 0 is the only teacher chunk
            continue
        logp = jax.nn.log_softmax(chunks[v], axis=-1)
        total = total + jnp.mean(jnp.sum(-q * logp, axis=-1))
        n += 1
    return total / n


def update_center(center, teacher_output, center_momentum=0.9):
    # TODO(synk): torch.distributed.all_reduce has no single-device Pallas
    # equivalent; this is the world_size == 1 EMA update in plain JAX.
    batch_center = jnp.sum(teacher_output, axis=0, keepdims=True) / teacher_output.shape[0]
    return center * center_momentum + batch_center * (1.0 - center_momentum)


if __name__ == "__main__":
    # Module hyper-parameters (mirrors DINOLoss.__init__).
    out_dim = 128
    ncrops = 4
    warmup_teacher_temp = 0.04
    teacher_temp = 0.07
    warmup_teacher_temp_epochs = 5
    nepochs = 20
    student_temp = 0.1
    center_momentum = 0.9
    epoch = 3

    teacher_temp_schedule = np.concatenate((
        np.linspace(warmup_teacher_temp, teacher_temp, warmup_teacher_temp_epochs),
        np.ones(nepochs - warmup_teacher_temp_epochs) * teacher_temp,
    ))
    temp = float(teacher_temp_schedule[epoch])

    key = jax.random.PRNGKey(0)
    k1, k2, k3, k4, k5 = jax.random.split(key, 5)

    # ---- primary f32 check (small shapes) -----------------------------------
    B = 8
    student_output = jax.random.normal(k1, (ncrops * B, out_dim), dtype=jnp.float32)
    teacher_output = jax.random.normal(k2, (B, out_dim), dtype=jnp.float32)
    center = jnp.zeros((1, out_dim), dtype=jnp.float32)   # registered buffer init

    loss = dino_loss_pallas(student_output, teacher_output, center, temp,
                            ncrops, student_temp)
    loss = jax.block_until_ready(loss)
    ref = dino_loss_ref(student_output, teacher_output, center, temp,
                        ncrops, student_temp)
    np.testing.assert_allclose(np.asarray(loss), np.asarray(ref),
                               rtol=1e-4, atol=1e-4)

    # ---- bf16 student activations (halves HBM traffic; kernel upcasts) ------
    B16 = 16   # bf16 row tiles must be multiples of 16
    student_bf16 = jax.random.normal(k3, (ncrops * B16, out_dim),
                                     dtype=jnp.float32).astype(jnp.bfloat16)
    teacher16 = jax.random.normal(k4, (B16, out_dim), dtype=jnp.float32)
    loss_bf16 = dino_loss_pallas(student_bf16, teacher16, center, temp,
                                 ncrops, student_temp)
    loss_bf16 = jax.block_until_ready(loss_bf16)
    ref_bf16 = dino_loss_ref(student_bf16.astype(jnp.float32), teacher16,
                             center, temp, ncrops, student_temp)
    np.testing.assert_allclose(np.asarray(loss_bf16), np.asarray(ref_bf16),
                               rtol=1e-4, atol=1e-4)

    # ---- multi-row-tile path (exercises the "parallel" r axis & partials) ---
    B32 = 32
    student32 = jax.random.normal(k5, (ncrops * B32, out_dim), dtype=jnp.float32)
    teacher32 = jax.random.normal(k2, (B32, out_dim), dtype=jnp.float32)
    loss32 = dino_loss_pallas(student32, teacher32, center, temp, ncrops,
                              student_temp, target_block_bytes=4096)  # forces TB=8, 4 row tiles
    loss32 = jax.block_until_ready(loss32)
    ref32 = dino_loss_ref(student32, teacher32, center, temp, ncrops, student_temp)
    np.testing.assert_allclose(np.asarray(loss32), np.asarray(ref32),
                               rtol=1e-4, atol=1e-4)

    new_center = update_center(center, teacher_output, center_momentum)
    jax.block_until_ready(new_center)

    print("KERNEL_OK")
</pallas_src>

<mosaic_0001>
module attributes {stable_mosaic.version = 11 : i64} {
  func.func @_dino_loss_kernel(%arg0: i32, %arg1: i32, %arg2: memref<8x128xf32, #tpu.memory_space<vmem>>, %arg3: memref<1x128xf32, #tpu.memory_space<vmem>>, %arg4: memref<8x128xf32, #tpu.memory_space<vmem>>, %arg5: memref<1x8x128xf32, #tpu.memory_space<vmem>>, %arg6: memref<8x128xf32, #tpu.memory_space<vmem>>, %arg7: memref<8x1xf32, #tpu.memory_space<vmem>>, %arg8: memref<8x1xf32, #tpu.memory_space<vmem>>) attributes {dimension_semantics = [#tpu.dimension_semantics<parallel>, #tpu.dimension_semantics<arbitrary>], iteration_bounds = array<i64: 1, 3>, scalar_prefetch = 0 : i64, scratch_operands = 3 : i64, tpu.core_type = #tpu.core_type<tc>, window_params = [{transform_indices = @transform_0, window_bounds = array<i64: 8, 128>}, {pipeline_mode = #tpu.pipeline_mode<synchronous>, transform_indices = @transform_1, window_bounds = array<i64: 1, 128>}, {transform_indices = @transform_2, window_bounds = array<i64: 8, 128>}, {transform_indices = @transform_3, window_bounds = array<i64: 1, 8, 128>}]} {
    %c0_i32 = arith.constant 0 : i32
    %0 = arith.cmpi eq, %arg1, %c0_i32 : i32
    %1 = arith.extui %0 : i1 to i32
    %c0_i32_0 = arith.constant 0 : i32
    %2 = arith.cmpi ne, %1, %c0_i32_0 : i32
    scf.if %2 {
      %cst_20 = arith.constant 0.000000e+00 : f32
      %37 = vector.broadcast %cst_20 : f32 to vector<8x1xf32>
      %c0_21 = arith.constant 0 : index
      %c0_22 = arith.constant 0 : index
      %38 = vector.load %arg8[%c0_21, %c0_22] : memref<8x1xf32, #tpu.memory_space<vmem>>, vector<8x1xf32>
      tpu.vector_store %arg8[%c0_21, %c0_22], %37 {strides = array<i32>} : memref<8x1xf32, #tpu.memory_space<vmem>>, vector<8x1xf32>,
      %cst_23 = arith.constant 0xFF800000 : f32
      %39 = vector.broadcast %cst_23 : f32 to vector<8x1xf32>
      %c0_24 = arith.constant 0 : index
      %c0_25 = arith.constant 0 : index
      %40 = vector.load %arg2[%c0_24, %c0_25] : memref<8x128xf32, #tpu.memory_space<vmem>>, vector<8x128xf32>
      %c0_26 = arith.constant 0 : index
      %c0_27 = arith.constant 0 : index
      %41 = vector.load %arg3[%c0_26, %c0_27] : memref<1x128xf32, #tpu.memory_space<vmem>>, vector<1x128xf32>
      %42 = vector.broadcast %41 : vector<1x128xf32> to vector<8x128xf32>
      %43 = arith.subf %40, %42 : vector<8x128xf32>
      %cst_28 = arith.constant 1.600000e+01 : f32
      %44 = vector.broadcast %cst_28 : f32 to vector<8x128xf32>
      %45 = arith.mulf %43, %44 : vector<8x128xf32>
      %cst_29 = arith.constant dense<0xFF800000> : vector<8xf32>
      %46 = vector.multi_reduction <maximumf>, %45, %cst_29 [1] : vector<8x128xf32> to vector<8xf32>
      %47 = vector.shape_cast %46 : vector<8xf32> to vector<8x1xf32>
      %48 = arith.maximumf %39, %47 : vector<8x1xf32>
      %cst_30 = arith.constant 0.000000e+00 : f32
      %49 = vector.broadcast %cst_30 : f32 to vector<8x1xf32>
      %c0_31 = arith.constant 0 : index
      %c0_32 = arith.constant 0 : index
      %50 = vector.load %arg2[%c0_31, %c0_32] : memref<8x128xf32, #tpu.memory_space<vmem>>, vector<8x128xf32>
      %c0_33 = arith.constant 0 : index
      %c0_34 = arith.constant 0 : index
      %51 = vector.load %arg3[%c0_33, %c0_34] : memref<1x128xf32, #tpu.memory_space<vmem>>, vector<1x128xf32>
      %52 = vector.broadcast %51 : vector<1x128xf32> to vector<8x128xf32>
      %53 = arith.subf %50, %52 : vector<8x128xf32>
      %cst_35 = arith.constant 1.600000e+01 : f32
      %54 = vector.broadcast %cst_35 : f32 to vector<8x128xf32>
      %55 = arith.mulf %53, %54 : vector<8x128xf32>
      %56 = vector.broadcast %48 : vector<8x1xf32> to vector<8x128xf32>
      %57 = arith.subf %55, %56 : vector<8x128xf32>
      %58 = math.exp %57 : vector<8x128xf32>
      %c0_36 = arith.constant 0 : index
      %c0_37 = arith.constant 0 : index
      %59 = vector.load %arg6[%c0_36, %c0_37] : memref<8x128xf32, #tpu.memory_space<vmem>>, vector<8x128xf32>
      tpu.vector_store %arg6[%c0_36, %c0_37], %58 {strides = array<i32>} : memref<8x128xf32, #tpu.memory_space<vmem>>, vector<8x128xf32>,
      %cst_38 = arith.constant dense<0.000000e+00> : vector<8xf32>
      %60 = vector.multi_reduction <add>, %58, %cst_38 [1] : vector<8x128xf32> to vector<8xf32>
      %61 = vector.shape_cast %60 : vector<8xf32> to vector<8x1xf32>
      %62 = arith.addf %49, %61 : vector<8x1xf32>
      %63 = tpu.reciprocal %62 : vector<8x1xf32> -> vector<8x1xf32>
      %c0_39 = arith.constant 0 : index
      %c0_40 = arith.constant 0 : index
      %64 = vector.load %arg7[%c0_39, %c0_40] : memref<8x1xf32, #tpu.memory_space<vmem>>, vector<8x1xf32>
      tpu.vector_store %arg7[%c0_39, %c0_40], %63 {strides = array<i32>} : memref<8x1xf32, #tpu.memory_space<vmem>>, vector<8x1xf32>,
    } else {
    }
    %cst = arith.constant 0xFF800000 : f32
    %3 = vector.broadcast %cst : f32 to vector<8x1xf32>
    %c0 = arith.constant 0 : index
    %c0_1 = arith.constant 0 : index
    %4 = vector.load %arg4[%c0, %c0_1] : memref<8x128xf32, #tpu.memory_space<vmem>>, vector<8x128xf32>
    %cst_2 = arith.constant 1.000000e+01 : f32
    %5 = vector.broadcast %cst_2 : f32 to vector<8x128xf32>
    %6 = arith.mulf %4, %5 : vector<8x128xf32>
    %cst_3 = arith.constant dense<0xFF800000> : vector<8xf32>
    %7 = vector.multi_reduction <maximumf>, %6, %cst_3 [1] : vector<8x128xf32> to vector<8xf32>
    %8 = vector.shape_cast %7 : vector<8xf32> to vector<8x1xf32>
    %9 = arith.maximumf %3, %8 : vector<8x1xf32>
    %cst_4 = arith.constant 0.000000e+00 : f32
    %10 = vector.broadcast %cst_4 : f32 to vector<8x1xf32>
    %cst_5 = arith.constant 0.000000e+00 : f32
    %11 = vector.broadcast %cst_5 : f32 to vector<8x1xf32>
    %c0_6 = arith.constant 0 : index
    %c0_7 = arith.constant 0 : index
    %12 = vector.load %arg4[%c0_6, %c0_7] : memref<8x128xf32, #tpu.memory_space<vmem>>, vector<8x128xf32>
    %cst_8 = arith.constant 1.000000e+01 : f32
    %13 = vector.broadcast %cst_8 : f32 to vector<8x128xf32>
    %14 = arith.mulf %12, %13 : vector<8x128xf32>
    %15 = vector.broadcast %9 : vector<8x1xf32> to vector<8x128xf32>
    %16 = arith.subf %14, %15 : vector<8x128xf32>
    %17 = math.exp %16 : vector<8x128xf32>
    %cst_9 = arith.constant dense<0.000000e+00> : vector<8xf32>
    %18 = vector.multi_reduction <add>, %17, %cst_9 [1] : vector<8x128xf32> to vector<8xf32>
    %19 = vector.shape_cast %18 : vector<8xf32> to vector<8x1xf32>
    %20 = arith.addf %10, %19 : vector<8x1xf32>
    %c0_10 = arith.constant 0 : index
    %c0_11 = arith.constant 0 : index
    %21 = vector.load %arg6[%c0_10, %c0_11] : memref<8x128xf32, #tpu.memory_space<vmem>>, vector<8x128xf32>
    %22 = arith.mulf %21, %14 : vector<8x128xf32>
    %cst_12 = arith.constant dense<0.000000e+00> : vector<8xf32>
    %23 = vector.multi_reduction <add>, %22, %cst_12 [1] : vector<8x128xf32> to vector<8xf32>
    %24 = vector.shape_cast %23 : vector<8xf32> to vector<8x1xf32>
    %25 = arith.addf %11, %24 : vector<8x1xf32>
    %c0_13 = arith.constant 0 : index
    %c0_14 = arith.constant 0 : index
    %26 = vector.load %arg8[%c0_13, %c0_14] : memref<8x1xf32, #tpu.memory_space<vmem>>, vector<8x1xf32>
    %c0_15 = arith.constant 0 : index
    %c0_16 = arith.constant 0 : index
    %27 = vector.load %arg7[%c0_15, %c0_16] : memref<8x1xf32, #tpu.memory_space<vmem>>, vector<8x1xf32>
    %28 = arith.mulf %25, %27 : vector<8x1xf32>
    %29 = arith.subf %28, %9 : vector<8x1xf32>
    %30 = math.log %20 : vector<8x1xf32>
    %31 = arith.subf %29, %30 : vector<8x1xf32>
    %32 = arith.addf %26, %31 : vector<8x1xf32>
    %c0_17 = arith.constant 0 : index
    %c0_18 = arith.constant 0 : index
    %33 = vector.load %arg8[%c0_17, %c0_18] : memref<8x1xf32, #tpu.memory_space<vmem>>, vector<8x1xf32>
    tpu.vector_store %arg8[%c0_17, %c0_18], %32 {strides = array<i32>} : memref<8x1xf32, #tpu.memory_space<vmem>>, vector<8x1xf32>,
    %c2_i32 = arith.constant 2 : i32
    %34 = arith.cmpi eq, %arg1, %c2_i32 : i32
    %35 = arith.extui %34 : i1 to i32
    %c0_i32_19 = arith.constant 0 : i32
    %36 = arith.cmpi ne, %35, %c0_i32_19 : i32
    scf.if %36 {
      %c0_20 = arith.constant 0 : index
      %c0_21 = arith.constant 0 : index
      %37 = vector.load %arg8[%c0_20, %c0_21] : memref<8x1xf32, #tpu.memory_space<vmem>>, vector<8x1xf32>
      %38 = vector.shape_cast %37 : vector<8x1xf32> to vector<1x8x1xf32>
      %cst_22 = arith.constant dense<0.000000e+00> : vector<1xf32>
      %39 = vector.multi_reduction <add>, %38, %cst_22 [1, 2] : vector<1x8x1xf32> to vector<1xf32>
      %40 = vector.shape_cast %39 : vector<1xf32> to vector<1x1x1xf32>
      %41 = vector.extract %40[0, 0, 0] : f32 from vector<1x1x1xf32>
      %cst_23 = arith.constant -0.0416666679 : f32
      %42 = arith.mulf %41, %cst_23 : f32
      %43 = vector.broadcast %42 : f32 to vector<1x8x128xf32>
      %c0_24 = arith.constant 0 : index
      %c0_25 = arith.constant 0 : index
      %c0_26 = arith.constant 0 : index
      %44 = vector.load %arg5[%c0_24, %c0_25, %c0_26] : memref<1x8x128xf32, #tpu.memory_space<vmem>>, vector<1x8x128xf32>
      tpu.vector_store %arg5[%c0_24, %c0_25, %c0_26], %43 {strides = array<i32>} : memref<1x8x128xf32, #tpu.memory_space<vmem>>, vector<1x8x128xf32>,
    } else {
    }
    return
  }
  func.func @transform_0(%arg0: i32, %arg1: i32) -> (i32, i32) {
    %c0_i32 = arith.constant 0 : i32
    %c0_i32_0 = arith.constant 0 : i32
    return %arg0, %c0_i32 : i32, i32
  }
  func.func @transform_1(%arg0: i32, %arg1: i32) -> (i32, i32) {
    %c0_i32 = arith.constant 0 : i32
    %c0_i32_0 = arith.constant 0 : i32
    %c0_i32_1 = arith.constant 0 : i32
    return %c0_i32, %c0_i32_0 : i32, i32
  }
  func.func @transform_2(%arg0: i32, %arg1: i32) -> (i32, i32) {
    %c1_i32 = arith.constant 1 : i32
    %0 = arith.addi %arg1, %c1_i32 : i32
    %c1_i32_0 = arith.constant 1 : i32
    %1 = arith.muli %0, %c1_i32_0 : i32
    %2 = arith.addi %1, %arg0 : i32
    %c0_i32 = arith.constant 0 : i32
    %c0_i32_1 = arith.constant 0 : i32
    return %2, %c0_i32 : i32, i32
  }
  func.func @transform_3(%arg0: i32, %arg1: i32) -> (i32, i32, i32) {
    %c0_i32 = arith.constant 0 : i32
    %c0_i32_0 = arith.constant 0 : i32
    %c0_i32_1 = arith.constant 0 : i32
    return %arg0, %c0_i32, %c0_i32_0 : i32, i32, i32
  }
}

</mosaic_0001>

<bundles_post_ra>
// kernel: tpu_custom_call.1
= control target key start
LH: loop header
LB: loop body
LE: loop exit
PB: predicated region body
PF: predicated region fallthrough
CT: control target
= control target key end

     0   :  { %8 = vsyncpa [#allocation6], 0  ;;  %s828_s0 = inlined_call_operand.hbm [shape: f32[8,128], index: 0, kind: input, shape index: {}]   ;;  %s829_s1 = inlined_call_operand.vmem [shape: f32[1,128], index: 1, kind: input, shape index: {}]   ;;  %s830_s2 = inlined_call_operand.hbm [shape: f32[32,128], index: 2, kind: input, shape index: {}]   ;;  %s831_s3 = inlined_call_operand.hbm [shape: f32[1,8,128], index: 3, kind: output, shape index: {}]  }
   0x1   :  { %9 = vsyncpa [#allocation9], 0 }
   0x2   :  { %11 = vsyncpa [#allocation9 + $0x1], 0 }
   0x3   :  { %12 = vsyncpa [#allocation7], 0  ;;  %s644_s12 = smov 0   ;;  %s646_s13 = smov 0  }
   0x4   :  { %s648_s14 = smov 0   ;;  %s650_s15 = smov 0  }
   0x5   :  { %s652_s16 = smov 0   ;;  %s654_s17 = smov 0  }
   0x6 LB: > { %s375_s18 = sadd.s32 4294967295, %s618_s17   ;;  %p101_p0 = scmp.ne.s32.totalorder %s602_s13, %s598_s12  ;;  %s618_s17 = sphi %s654_s17, %s18_s17   ;;  %s614_s16 = sphi %s652_s16, %s850_s16   ;;  %s610_s15 = sphi %s650_s15, %s849_s15   ;;  %s606_s14 = sphi %s648_s14, %s848_s14   ;;  %s602_s13 = sphi %s646_s13, %s847_s13   ;;  %s598_s12 = sphi %s644_s12, %s846_s12  }
   0x7   : > { %p676_p1 = scmp.eq.s32.totalorder %s375_s18, 0  ;;  %p376_p2 = scmp.ge.s32.totalorder %s618_s17, 1 }
   0x8   : > { %p138_p3 = scmp.lt.s32.totalorder %s618_s17, 4  ;;  %s620_s22 = smov [#allocation5]  }
   0x9   : > { %s836_s19 = scalar_select %p676_p1, 1, 0 }
   0xa   : > { %p684_p4 = por %p676_p1, %p101_p0  ;;  %p688_p5 = pnand %p376_p2, %p138_p3 }
   0xb   : > { %s153_s23 = sshll.u32 %s620_s22, 4  ;;  %s27_s25 = sadd.s32 1, %s614_s16  ;;  %s154_s23 = int_to_ptr.vmem [resolvable:$true] %s153_s23 }
   0xc   : > { %s837_s20 = scalar_select %p684_p4, 1, 0 }
   0xd   : > { %s838_s21 = scalar_select %p688_p5, 1, 0 }
   0xe   : > { %p403_p6 = pneg %p688_p5  ;;  %s475_s28 = scalar_lea.hbm %s828_s0, 128 }
   0xf   : > { %p476_p9 = scmp.ne.s32.totalorder %s828_s0, %s475_s28  ;;  %p482_p13 = scmp.lt.u32.totalorder %s475_s28, %s828_s0 }
  0x10   : > { %p696_p7 = pnand %p403_p6, %p676_p1 }
  0x12   : > { %p477_p10 = pneg %p696_p7 }
  0x14   : > { %p478_p11 = pnand %p477_p10, %p476_p9 }
  0x16   : > { %p479_p12 = pneg %p478_p11 }
  0x18   : > { %p484_p0 = pnand %p482_p13, %p479_p12 }
  0x1a   : > { %487 = shalt.err (!%p484_p0)
}
  0x1b   : > { %s488_s6 = scalar_lea.vmem %s154_s23, 128  ;;  %p496_p8 = scmp.lt.s32.totalorder %s154_s23, %s154_s23 }
  0x1c   : > { %p489_p2 = scmp.ne.s32.totalorder %s154_s23, %s488_s6  ;;  %p497_p4 = scmp.lt.s32.totalorder %s488_s6, %s488_s6 }
  0x1e   : > { %p491_p3 = pnand %p489_p2, %p477_p10  ;;  %p498_p1 = por %p497_p4, %p496_p8 }
  0x20   : > { %p492_p6 = pneg %p491_p3 }
  0x22   : > { %p499_p5 = pnand %p498_p1, %p492_p6 }
  0x24   : > { %502 = shalt.err (!%p499_p5)
}
  0x25   : > { %406 = dma.hbm_to_vmem [thread:$0]  (!%p696_p7), %s828_s0, 128, %s154_s23, [#allocation6]  }
  0x26   : > { %p840_p9 = scmp.ge.s32.totalorder %s27_s25, 3  ;;  %p95_p1 = scmp.ne.s32.totalorder %s606_s14, %s602_s13 }
  0x27   : > { %p96_p4 = scmp.eq.s32.totalorder %s618_s17, 0  ;;  %s88_s11 = sadd.s32 1, %s606_s14 }
  0x28   : > { %s718_s9 = scalar_select %p840_p9, 0, %s27_s25  }
  0x29   : > { %p412_p5 = scmp.lt.s32.totalorder %s618_s17, 3  ;;  %s167_s22 = sand.u32 1, %s606_s14  }
  0x2a   : > { %s83_s10 = sadd.s32 1, %s718_s9  ;;  %p97_p10 = por %p96_p4, %p95_p1 }
  0x2b   : > { %s85_s12 = ssub.s32 %s27_s25, %s83_s10  ;;  %s379_s24 = sshll.u32 %s167_s22, 3 }
  0x2c   : > { %p86_p8 = scmp.eq.s32.totalorder %s85_s12, 0  ;;  %s380_s27 = sshll.u32 %s614_s16, 7 }
  0x2d   : > { %s327_s23 = scalar_lea.hbm %s830_s2, %s380_s27  ;;  %s171_s30 = scalar_lea.vmem [#allocation8], %s379_s24 }
  0x2e   : > { %s728_s26 = scalar_select %p86_p8, %s606_s14, %s88_s11  }
  0x2f   : > { %s180_s4 = sshll.u32 %s171_s30, 4  ;;  %s734_s5 = scalar_lea.hbm %s327_s23, 128  ;;  %s736_s4 = int_to_ptr.vmem [resolvable:$true] %s180_s4 }
  0x30   : > { %p738_p7 = pnand %p412_p5, %p97_p10  ;;  %s168_s6 = scalar_lea.sflag [#allocation9], %s167_s22 }
  0x31   : > { %s533_s7 = scalar_lea.hbm %s327_s23, 256  ;;  %s508_s11 = scalar_lea.hbm %s830_s2, 512 }
  0x32   : > { %p504_p11 = scmp.ne.s32.totalorder %s734_s5, %s533_s7  ;;  %p505_p12 = pneg %p738_p7 }
  0x33   : > { %p509_p2 = scmp.lt.u32.totalorder %s734_s5, %s830_s2  ;;  %p510_p3 = scmp.lt.u32.totalorder %s508_s11, %s533_s7 }
  0x34   : > { %p506_p13 = pnand %p505_p12, %p504_p11  ;;  %p512_p9 = scmp.lt.u32.totalorder %s533_s7, %s734_s5 }
  0x35   : > { %p511_p6 = por %p510_p3, %p509_p2 }
  0x36   : > { %p507_p0 = pneg %p506_p13 }
  0x37   : > { %p513_p1 = por %p512_p9, %p511_p6 }
  0x39   : > { %p514_p4 = pnand %p513_p1, %p507_p0 }
  0x3b   : > { %517 = shalt.err (!%p514_p4)
}
  0x3c   : > { %s518_s22 = scalar_lea.vmem %s736_s4, 128  ;;  %s621_s27 = smov [#allocation8]  }
  0x3d   : > { %p519_p5 = scmp.ne.s32.totalorder %s736_s4, %s518_s22  ;;  %s523_s28 = sshll.u32 %s621_s27, 4  ;;  %s524_s28 = int_to_ptr.vmem [resolvable:$false] %s523_s28 }
  0x3e   : > { %s525_s29 = scalar_lea.vmem %s524_s28, 256  ;;  %p526_p11 = scmp.lt.s32.totalorder %s736_s4, %s524_s28 }
  0x3f   : > { %p521_p8 = pnand %p519_p5, %p505_p12  ;;  %p527_p13 = scmp.lt.s32.totalorder %s525_s29, %s518_s22 }
  0x41   : > { %p522_p10 = pneg %p521_p8  ;;  %p528_p2 = por %p527_p13, %p526_p11 }
  0x43   : > { %p529_p3 = pnand %p528_p2, %p522_p10 }
  0x45   : > { %532 = shalt.err (!%p529_p3)
}
  0x46   : > { %410 = dma.hbm_to_vmem [thread:$0]  (!%p738_p7), %s734_s5, 128, %s736_s4, %s168_s6  }
  0x47   : > { %p842_p0 = scmp.ne.s32.totalorder %s838_s21, 0 }
  0x48   : > { %p843_p12 = scmp.ne.s32.totalorder (!%p842_p0), %s836_s19, 0 }
  0x49   : > { %189 = sbr.rel (%p842_p0) target bundleno = 963 (0x3c3), region = 32 }
  0x50   : > { %585 = dma.done.wait (%p843_p12), [#allocation6], 128  }
  0x51   : > { %587 = vsyncadd (%p843_p12), [#allocation6], 4294967168  ;;  %s195_s23 = sand.u32 1, %s602_s13   ;;  %p844_p6 = scmp.ne.s32.totalorder %s837_s20, 0 }
  0x52   : > { %s383_s30 = sshll.u32 %s195_s23, 3  ;;  %s196_s7 = scalar_lea.sflag [#allocation9], %s195_s23 }
  0x53   : > { %s199_s8 = scalar_lea.vmem [#allocation8], %s383_s30 }
  0x54   : > { %589 = dma.done.wait (%p844_p6), %s196_s7, 128  }
  0x55   : > { %591 = vsyncadd (%p844_p6), %s196_s7, 4294967168  ;;  %p384_p7 = scmp.ne.s32.totalorder %s610_s15, 0 }
  0x56   : > { %v225_v0 = vld [vmem:[#allocation5] sm:$0xff] (!%p384_p7)  ;;  %v385_v1 = vld [vmem:[%s829_s1] ss:$0 sm:$0xff] (!%p384_p7)  ;;  %vm223_vm0 = vcmask (!%p384_p7), 7168   ;;  %v622_v8 = vmov (!%p384_p7), 0.0  }
  0x57   : > { %222 = sbr.rel (%p384_p7) target bundleno = 402 (0x192), region = 44  ;;  %v233_v2 = vsub.f32 (!%p384_p7), %v225_v0, %v385_v1  ;;  %224 = vst.msk [vmem:[#allocation4] sm:$0xff] (!%p384_p7), %vm223_vm0, %v622_v8 }
  0x59   : > { %v234_v3 = vmul.f32 (!%p384_p7), 16.0, %v233_v2 }
  0x5b   : > { %235 = vmax.xlane.f32.xlu0 (!%p384_p7), %v234_v3 }
  0xe8   : > { %v236_v4 = vpop.xlane.xlu0 %235 }
  0xe9   : > { %v237_v5 = vsub.f32 %v234_v3, %v236_v4 }
  0xeb   : > { %v238_v6 = vmul.f32 1.442695, %v237_v5 }
  0xed   : > { %467 = vpow2.f32 %v238_v6 }
  0xf7   : > { %v468_v7 = vpop.eup %467 }
  0xf8   : > { %240 = vst [vmem:[#allocation2] sm:$0xff] %v468_v7  ;;  %241 = vadd.xlane.f32.xlu0 %v468_v7 }
 0x185   : > { %v242_v9 = vpop.xlane.xlu0 %241 }
 0x186   : > { %469 = vrcp.f32 %v242_v9 }
 0x190   : > { %v470_v10 = vpop.eup %469 }
 0x191   : > { %245 = vst.msk [vmem:[#allocation3] sm:$0xff] %vm223_vm0, %v470_v10 }
 0x192 PF: > { %v246_v11 = vld [vmem:[%s199_s8] sm:$0xff]  ;;  %v261_v26 = vld [vmem:[#allocation4] sm:$0xff]  ;;  %vm269_vm1 = vcmask 7168   ;;  %p386_p9 = scmp.ne.s32.totalorder %s610_s15, 2 }
 0x193   : > { %v256_v12 = vld [vmem:[#allocation2] sm:$0xff]  ;;  %v247_v13 = vmul.f32 10.0, %v246_v11 }
 0x195   : > { %248 = vmax.xlane.f32.xlu0 %v247_v13  ;;  %v257_v14 = vmul.f32 %v256_v12, %v247_v13 }
 0x197   : > { %258 = vadd.xlane.f32.xlu1 %v257_v14 }
 0x198   : > { %v262_v20 = vld [vmem:[#allocation3] sm:$0xff] }
 0x222   : > { %v249_v15 = vpop.xlane.xlu0 %248 }
 0x223   : > { %v250_v16 = vsub.f32 %v247_v13, %v249_v15 }
 0x224   : > { %v259_v21 = vpop.xlane.xlu1 %258 }
 0x225   : > { %v251_v17 = vmul.f32 1.442695, %v250_v16  ;;  %v263_v22 = vmul.f32 %v262_v20, %v259_v21 }
 0x227   : > { %471 = vpow2.f32 %v251_v17  ;;  %v264_v24 = vsub.f32 %v263_v22, %v249_v15 }
 0x231   : > { %v472_v18 = vpop.eup %471 }
 0x232   : > { %253 = vadd.xlane.f32.xlu0 %v472_v18 }
 0x2bf   : > { %v254_v19 = vpop.xlane.xlu0 %253 }
 0x2c0   : > { %473 = vlog2.f32 %v254_v19 }
 0x2ca   : > { %v474_v23 = vpop.eup %473 }
 0x2cb   : > { %v266_v25 = vmul.f32 0.6931472, %v474_v23  ;;  %274 = sbr.rel (%p386_p9) target bundleno = 938 (0x3aa), region = 48 }
 0x2cd   : > { %v267_v27 = vsub.f32 %v264_v24, %v266_v25 }
 0x2cf   : > { %v268_v28 = vadd.f32 %v267_v27, %v261_v26 }
 0x2d1   : > { %270 = vst.msk [vmem:[#allocation4] sm:$0xff] %vm269_vm1, %v268_v28 }
 0x2d8   : > { %v275_v29 = vld [vmem:[#allocation4] sm:$0xff] }
 0x2d9   : > { %v276_v30 = vsel %vm269_vm1, %v275_v29, 0.0 }
 0x2da   : > { %277 = vadd.xlane.f32.xlu0 %v276_v30 }
 0x367   : > { %v278_v31 = vpop.xlane.xlu0 %277 }
 0x368   : > { %v279_v32 = vrot.slane %v278_v31, 4 }
 0x36a   : > { %v280_v33 = vadd.f32 %v279_v32, %v278_v31 }
 0x36c   : > { %v281_v34 = vrot.slane %v280_v33, 2 }
 0x36e   : > { %v282_v35 = vadd.f32 %v281_v34, %v280_v33 }
 0x370   : > { %v283_v36 = vrot.slane %v282_v35, 1 }
 0x372   : > { %v284_v37 = vadd.f32 %v283_v36, %v282_v35 }
 0x374   : > { %391 = vpush %v284_v37 }
 0x3a5   : > { %s392_s19 = spop %391 }
 0x3a6   : > { %s286_s20 = smul.f32 -0.041666668, %s392_s19 }
 0x3a8   : > { %v287_v38 = vstv %s286_s20 }
 0x3a9   : > { %288 = vst [vmem:[#allocation10] sm:$0xff] %v287_v38 }
 0x3aa PF: > { %p784_p1 = scmp.eq.s32.totalorder %s375_s18, 2  ;;  %s623_s5 = smov [#allocation10]  }
 0x3ab   : > { %s298_s25 = sshll.u32 %s623_s5, 4  ;;  %s299_s25 = int_to_ptr.vmem [resolvable:$true] %s298_s25 }
 0x3ac   : > { %s534_s6 = scalar_lea.vmem %s299_s25, 128  ;;  %p541_p10 = scmp.lt.s32.totalorder %s299_s25, %s299_s25 }
 0x3ad   : > { %p535_p4 = scmp.ne.s32.totalorder %s299_s25, %s534_s6  ;;  %p542_p11 = scmp.lt.s32.totalorder %s534_s6, %s534_s6 }
 0x3af   : > { %p536_p5 = pnand %p535_p4, %p784_p1  ;;  %p543_p13 = por %p542_p11, %p541_p10 }
 0x3b1   : > { %p537_p8 = pneg %p536_p5 }
 0x3b3   : > { %p544_p2 = pnand %p543_p13, %p537_p8 }
 0x3b5   : > { %547 = shalt.err (!%p544_p2)
}
 0x3b6   : > { %s548_s18 = scalar_lea.hbm %s831_s3, 128 }
 0x3b7   : > { %p549_p3 = scmp.ne.s32.totalorder %s831_s3, %s548_s18  ;;  %p554_p6 = scmp.lt.u32.totalorder %s548_s18, %s831_s3 }
 0x3b9   : > { %p550_p0 = pnand %p549_p3, %p784_p1 }
 0x3bb   : > { %p551_p12 = pneg %p550_p0 }
 0x3bd   : > { %p556_p7 = pnand %p554_p6, %p551_p12 }
 0x3bf   : > { %559 = shalt.err (!%p556_p7)
}
 0x3c0   : > { %400 = dma.vmem_to_hbm [thread:$0]  (%p784_p1), %s299_s25, 128, %s831_s3, [#allocation7]  }
 0x3c1   : > { %593 = dma.done.wait (%p784_p1), [#allocation7], 128  }
 0x3c2   : > { %595 = vsyncadd (%p784_p1), [#allocation7], 4294967168 }
 0x3c3 PF: > { %s18_s17 = sadd.s32 1, %s618_s17   ;;  %s846_s12 = smov %s602_s13 }
 0x3c4   : > { %p15_p9 = scmp.ge.s32.totalorder %s18_s17, 5   ;;  %s847_s13 = smov %s606_s14 }
 0x3c5   : > { %s848_s14 = smov %s728_s26  ;;  %s849_s15 = smov %s614_s16 }
 0x3c6   : > { %s850_s16 = smov %s718_s9  ;;  %17 = sbr.rel (!%p15_p9) target bundleno = 6 (0x6), region = 84 }
 0x3cd   :  { %311 = vsyncpa [#allocation6], 1 }
 0x3ce   :  { %313 = vsyncpa [#allocation6 + $0x1], 1 }
 0x3cf   :  { %314 = vsyncpa [#allocation9], 1 }
 0x3d0   :  { %316 = vsyncpa [#allocation9 + $0x1], 1 }
 0x3d1   :  { %317 = vsyncpa [#allocation7], 1 }
 0x3d2   :  { %319 = vsyncpa [#allocation7 + $0x1], 1 }

</bundles_post_ra>
